<compile_context>
chip_gen: v7x
topology: tpu7x:2x2x1
jax: 0.10.0
libtpu: 0.0.40
codegen_flags: <defaults>
</compile_context>

<pallas_src>
import functools

import jax
import jax.numpy as jnp
from jax.experimental import pallas as pl
from jax.experimental.pallas import tpu as pltpu


def graphrnn_kernel(
    xa_ref,                                # (B, F+W+1)  concat(nf, adj, ones)
    w_rnn_ref,                             # (F+W+1, H)  last row = b_ih + b_hh
    w1h_ref, w1x_ref,                      # (H, 96), (F+W+1, 96)  fused fc1 (bias folded)
    w2_ref, b2_ref,                        # (96, 384), (1, 384)   block-diag fc2
    w3_ref, b3_ref,                        # (384, 3*O), (1, 3*O)  block-diag fc3
    out_ref,                               # (B, 3*O + H)  [theta | phi | psi | h]
    *, O,
):
    xa = xa_ref[...]

    # graph-level RNN, single step, zero initial hidden state:
    #   h = tanh(x @ W_ih^T + b_ih + b_hh)      (bias folded into w_rnn via ones col)
    h = jnp.tanh(jnp.dot(xa, w_rnn_ref[...], preferred_element_type=jnp.float32))

    # fused 3-head MLP (heads stacked on the lane axis, fc2/fc3 block-diagonal).
    # fc1 on [h, x] expressed as a sum of two matmuls (no in-kernel concat);
    # fc1 bias folded into the x-side matmul via the ones column.
    a = (jnp.dot(h, w1h_ref[...], preferred_element_type=jnp.float32)
         + jnp.dot(xa, w1x_ref[...], preferred_element_type=jnp.float32))
    a = jnp.maximum(a, 0.0)
    a = jnp.maximum(
        jnp.dot(a, w2_ref[...], preferred_element_type=jnp.float32) + b2_ref[...],
        0.0,
    )
    y = jnp.dot(a, w3_ref[...], preferred_element_type=jnp.float32) + b3_ref[...]
    # y lanes: [0:O) edge logits, [O:2O) node logits, [2O:3O) stop logits.

    # per-segment activations without slicing into sub-128 lane chunks:
    lane = jax.lax.broadcasted_iota(jnp.int32, y.shape, 1)
    is_phi = (lane >= O) & (lane < 2 * O)

    sig = jax.nn.sigmoid(y)                              # theta / psi lanes
    y_phi = jnp.where(is_phi, y, -jnp.inf)               # mask non-phi lanes
    m = jnp.max(y_phi, axis=1, keepdims=True)
    e = jnp.exp(y_phi - m)                               # exp(-inf) = 0 off-segment
    inv = pl.reciprocal(jnp.sum(e, axis=1, keepdims=True), approx=False)
    probs = jnp.where(is_phi, e * inv, sig)              # (B, 3*O)

    # one lane-contiguous output slab: [theta | phi | psi | h]
    out_ref[...] = jnp.concatenate([probs, h], axis=1)


@jax.jit
def graphrnn_forward(node_features, adjacency, packed):
    B = node_features.shape[0]
    H = packed["w1h"].shape[0]
    O = packed["w3"].shape[1] // 3

    # one-time host concat + ones column (folds the RNN and fc1 biases into the
    # x-side matmuls; replaces extra in-kernel adds / DMAs)
    ones = jnp.ones((B, 1), jnp.float32)
    xa = jnp.concatenate([node_features, adjacency, ones], axis=1)

    args = (xa,
            packed["w_rnn"],
            packed["w1h"], packed["w1x"],
            packed["w2"], packed["b2"],
            packed["w3"], packed["b3"])

    vmem = pl.BlockSpec(memory_space=pltpu.MemorySpace.VMEM)
    out = pl.pallas_call(
        functools.partial(graphrnn_kernel, O=O),
        out_shape=jax.ShapeDtypeStruct((B, 3 * O + H), jnp.float32),
        in_specs=[vmem] * len(args),
        out_specs=vmem,
    )(*args)

    theta = out[:, 0:O]
    phi = out[:, O:2 * O]
    psi = out[:, 2 * O:3 * O]
    graph_h = out[:, 3 * O:]
    return theta, phi, psi, graph_h


# ----------------------------- parameter setup ------------------------------

def _linear_init(key, fan_in, fan_out):
    # PyTorch nn.Linear default: U(-1/sqrt(fan_in), 1/sqrt(fan_in))
    k1, k2 = jax.random.split(key)
    bound = 1.0 / float(fan_in) ** 0.5
    w = jax.random.uniform(k1, (fan_out, fan_in), jnp.float32, -bound, bound)
    b = jax.random.uniform(k2, (fan_out,), jnp.float32, -bound, bound)
    return w, b


def init_raw_params(key, F, W, H, O):
    D1 = F + W          # RNN input size
    D2 = H + F + W      # MLP input size
    keys = jax.random.split(key, 12)
    # PyTorch nn.RNN init: all params U(-1/sqrt(hidden_size), 1/sqrt(hidden_size))
    bound = 1.0 / float(H) ** 0.5
    rnn_wih = jax.random.uniform(keys[0], (H, D1), jnp.float32, -bound, bound)
    rnn_bih = jax.random.uniform(keys[1], (H,), jnp.float32, -bound, bound)
    rnn_bhh = jax.random.uniform(keys[2], (H,), jnp.float32, -bound, bound)
    raw = {"rnn_wih": rnn_wih, "rnn_bih": rnn_bih, "rnn_bhh": rnn_bhh}
    head_keys = (keys[3:6], keys[6:9], keys[9:12])   # no key reuse
    for name, kk in zip(("edge", "node", "stop"), head_keys):
        w1, b1 = _linear_init(kk[0], D2, 32)
        w2, b2 = _linear_init(kk[1], 32, 128)
        w3, b3 = _linear_init(kk[2], 128, O)
        raw[name] = (w1, b1, w2, b2, w3, b3)
    return raw


def pack_params(raw, F, W, H):
    """Transpose to [in, out], fold biases that depend only on x into the
    x-side weights (extra ones row), stack the three MLP heads along the
    output axis (fc1) and as block-diagonal matrices (fc2/fc3)."""
    names = ("edge", "node", "stop")
    w1s = [raw[n][0] for n in names]                 # each (32, H+F+W)
    b1_cat = jnp.concatenate([raw[n][1] for n in names])            # (96,)
    w1x_cat = jnp.concatenate([w[:, H:].T for w in w1s], axis=1)    # (F+W, 96)
    packed = {
        # RNN weight with b_ih + b_hh folded in as the last (ones) row
        "w_rnn": jnp.concatenate(
            [raw["rnn_wih"].T, (raw["rnn_bih"] + raw["rnn_bhh"])[None, :]],
            axis=0),                                                 # (F+W+1, H)
        # fc1: hidden-part and feature-part, heads stacked on output axis;
        # fc1 bias folded into the feature-part as the last (ones) row
        "w1h": jnp.concatenate([w[:, :H].T for w in w1s], axis=1),   # (H, 96)
        "w1x": jnp.concatenate([w1x_cat, b1_cat[None, :]], axis=0),  # (F+W+1, 96)
        # fc2 / fc3: block-diagonal so one matmul serves all three heads
        "w2": jax.scipy.linalg.block_diag(*[raw[n][2].T for n in names]),   # (96, 384)
        "b2": jnp.concatenate([raw[n][3] for n in names])[None, :],         # (1, 384)
        "w3": jax.scipy.linalg.block_diag(*[raw[n][4].T for n in names]),   # (384, 3*O)
        "b3": jnp.concatenate([raw[n][5] for n in names])[None, :],         # (1, 3*O)
    }
    return packed


def graphrnn_reference(nf, adj, raw):
    """Pure-JAX reference mirroring the intended PyTorch forward."""
    x = jnp.concatenate([nf, adj], axis=1)
    h = jnp.tanh(x @ raw["rnn_wih"].T + raw["rnn_bih"] + raw["rnn_bhh"])
    x2 = jnp.concatenate([h, nf, adj], axis=1)

    def mlp(xx, p):
        w1, b1, w2, b2, w3, b3 = p
        a = jax.nn.relu(xx @ w1.T + b1)
        a = jax.nn.relu(a @ w2.T + b2)
        return a @ w3.T + b3

    theta = jax.nn.sigmoid(mlp(x2, raw["edge"]))
    phi = jax.nn.softmax(mlp(x2, raw["node"]), axis=1)
    psi = jax.nn.sigmoid(mlp(x2, raw["stop"]))
    return theta, phi, psi, h


if __name__ == "__main__":
    B = 2        # batch
    F = 4        # input_size (node-feature dim)
    W = 8        # window_size (adjacency vector length)
    H = 32       # hidden_size
    O = 8        # output_size (== window_size here)

    key = jax.random.PRNGKey(0)
    k_nf, k_adj, k_p = jax.random.split(key, 3)
    node_features = jax.random.normal(k_nf, (B, F), jnp.float32)
    adjacency = (jax.random.uniform(k_adj, (B, W), jnp.float32) > 0.5).astype(jnp.float32)

    raw = init_raw_params(k_p, F, W, H, O)
    packed = pack_params(raw, F, W, H)

    theta, phi, psi, graph_h = graphrnn_forward(node_features, adjacency, packed)
    jax.block_until_ready((theta, phi, psi, graph_h))

    # correctness check against a pure-JAX reference
    rt, rp, rs, rh = graphrnn_reference(node_features, adjacency, raw)
    for got, want in ((theta, rt), (phi, rp), (psi, rs), (graph_h, rh)):
        assert got.shape == want.shape and got.dtype == want.dtype
        assert jnp.allclose(got, want, atol=1e-5, rtol=1e-5), "mismatch vs reference"

    print("KERNEL_OK")
</pallas_src>

<mosaic_0001>
module attributes {stable_mosaic.version = 11 : i64} {
  func.func @graphrnn_kernel(%arg0: memref<2x13xf32, #tpu.memory_space<vmem>>, %arg1: memref<13x32xf32, #tpu.memory_space<vmem>>, %arg2: memref<32x96xf32, #tpu.memory_space<vmem>>, %arg3: memref<13x96xf32, #tpu.memory_space<vmem>>, %arg4: memref<96x384xf32, #tpu.memory_space<vmem>>, %arg5: memref<1x384xf32, #tpu.memory_space<vmem>>, %arg6: memref<384x24xf32, #tpu.memory_space<vmem>>, %arg7: memref<1x24xf32, #tpu.memory_space<vmem>>, %arg8: memref<2x56xf32, #tpu.memory_space<vmem>>) attributes {dimension_semantics = [], scalar_prefetch = 0 : i64, scratch_operands = 0 : i64, tpu.core_type = #tpu.core_type<tc>} {
    %c0 = arith.constant 0 : index
    %c0_0 = arith.constant 0 : index
    %0 = vector.load %arg0[%c0, %c0_0] : memref<2x13xf32, #tpu.memory_space<vmem>>, vector<2x13xf32>
    %c0_1 = arith.constant 0 : index
    %c0_2 = arith.constant 0 : index
    %1 = vector.load %arg1[%c0_1, %c0_2] : memref<13x32xf32, #tpu.memory_space<vmem>>, vector<13x32xf32>
    %cst = arith.constant dense<0.000000e+00> : vector<2x32xf32>
    %2 = tpu.matmul %0, %1, %cst {dimension_numbers = #tpu.dot_dimension_numbers<[1], [0], [0], [1], [0, 0, 1, 1], [], []>} : vector<2x13xf32>, vector<13x32xf32>, vector<2x32xf32> -> vector<2x32xf32>
    %3 = math.tanh %2 : vector<2x32xf32>
    %c0_3 = arith.constant 0 : index
    %c0_4 = arith.constant 0 : index
    %4 = vector.load %arg2[%c0_3, %c0_4] : memref<32x96xf32, #tpu.memory_space<vmem>>, vector<32x96xf32>
    %cst_5 = arith.constant dense<0.000000e+00> : vector<2x96xf32>
    %5 = tpu.matmul %3, %4, %cst_5 {dimension_numbers = #tpu.dot_dimension_numbers<[1], [0], [0], [1], [0, 0, 1, 1], [], []>} : vector<2x32xf32>, vector<32x96xf32>, vector<2x96xf32> -> vector<2x96xf32>
    %c0_6 = arith.constant 0 : index
    %c0_7 = arith.constant 0 : index
    %6 = vector.load %arg3[%c0_6, %c0_7] : memref<13x96xf32, #tpu.memory_space<vmem>>, vector<13x96xf32>
    %cst_8 = arith.constant dense<0.000000e+00> : vector<2x96xf32>
    %7 = tpu.matmul %0, %6, %cst_8 {dimension_numbers = #tpu.dot_dimension_numbers<[1], [0], [0], [1], [0, 0, 1, 1], [], []>} : vector<2x13xf32>, vector<13x96xf32>, vector<2x96xf32> -> vector<2x96xf32>
    %8 = arith.addf %5, %7 : vector<2x96xf32>
    %cst_9 = arith.constant 0.000000e+00 : f32
    %9 = vector.broadcast %cst_9 : f32 to vector<2x96xf32>
    %10 = arith.maximumf %8, %9 : vector<2x96xf32>
    %c0_10 = arith.constant 0 : index
    %c0_11 = arith.constant 0 : index
    %11 = vector.load %arg4[%c0_10, %c0_11] : memref<96x384xf32, #tpu.memory_space<vmem>>, vector<96x384xf32>
    %cst_12 = arith.constant dense<0.000000e+00> : vector<2x384xf32>
    %12 = tpu.matmul %10, %11, %cst_12 {dimension_numbers = #tpu.dot_dimension_numbers<[1], [0], [0], [1], [0, 0, 1, 1], [], []>} : vector<2x96xf32>, vector<96x384xf32>, vector<2x384xf32> -> vector<2x384xf32>
    %c0_13 = arith.constant 0 : index
    %c0_14 = arith.constant 0 : index
    %13 = vector.load %arg5[%c0_13, %c0_14] : memref<1x384xf32, #tpu.memory_space<vmem>>, vector<1x384xf32>
    %14 = vector.broadcast %13 : vector<1x384xf32> to vector<2x384xf32>
    %15 = arith.addf %12, %14 : vector<2x384xf32>
    %cst_15 = arith.constant 0.000000e+00 : f32
    %16 = vector.broadcast %cst_15 : f32 to vector<2x384xf32>
    %17 = arith.maximumf %15, %16 : vector<2x384xf32>
    %c0_16 = arith.constant 0 : index
    %c0_17 = arith.constant 0 : index
    %18 = vector.load %arg6[%c0_16, %c0_17] : memref<384x24xf32, #tpu.memory_space<vmem>>, vector<384x24xf32>
    %cst_18 = arith.constant dense<0.000000e+00> : vector<2x24xf32>
    %19 = tpu.matmul %17, %18, %cst_18 {dimension_numbers = #tpu.dot_dimension_numbers<[1], [0], [0], [1], [0, 0, 1, 1], [], []>} : vector<2x384xf32>, vector<384x24xf32>, vector<2x24xf32> -> vector<2x24xf32>
    %c0_19 = arith.constant 0 : index
    %c0_20 = arith.constant 0 : index
    %20 = vector.load %arg7[%c0_19, %c0_20] : memref<1x24xf32, #tpu.memory_space<vmem>>, vector<1x24xf32>
    %21 = vector.broadcast %20 : vector<1x24xf32> to vector<2x24xf32>
    %22 = arith.addf %19, %21 : vector<2x24xf32>
    %23 = tpu.iota {dimensions = array<i32: 1>} : vector<2x24xi32>
    %c8_i32 = arith.constant 8 : i32
    %24 = vector.broadcast %c8_i32 : i32 to vector<2x24xi32>
    %25 = arith.cmpi sge, %23, %24 : vector<2x24xi32>
    %c16_i32 = arith.constant 16 : i32
    %26 = vector.broadcast %c16_i32 : i32 to vector<2x24xi32>
    %27 = arith.cmpi slt, %23, %26 : vector<2x24xi32>
    %28 = arith.andi %25, %27 : vector<2x24xi1>
    %29 = arith.negf %22 : vector<2x24xf32>
    %30 = math.exp %29 : vector<2x24xf32>
    %cst_21 = arith.constant 1.000000e+00 : f32
    %31 = vector.broadcast %cst_21 : f32 to vector<2x24xf32>
    %32 = arith.addf %31, %30 : vector<2x24xf32>
    %33 = arith.divf %31, %32 : vector<2x24xf32>
    %cst_22 = arith.constant 0xFF800000 : f32
    %34 = vector.broadcast %cst_22 : f32 to vector<2x24xf32>
    %35 = arith.select %28, %22, %34 : vector<2x24xi1>, vector<2x24xf32>
    %cst_23 = arith.constant dense<0xFF800000> : vector<2xf32>
    %36 = vector.multi_reduction <maximumf>, %35, %cst_23 [1] : vector<2x24xf32> to vector<2xf32>
    %37 = vector.shape_cast %36 : vector<2xf32> to vector<2x1xf32>
    %38 = vector.broadcast %37 : vector<2x1xf32> to vector<2x24xf32>
    %39 = arith.subf %35, %38 : vector<2x24xf32>
    %40 = math.exp %39 : vector<2x24xf32>
    %cst_24 = arith.constant dense<0.000000e+00> : vector<2xf32>
    %41 = vector.multi_reduction <add>, %40, %cst_24 [1] : vector<2x24xf32> to vector<2xf32>
    %42 = vector.shape_cast %41 : vector<2xf32> to vector<2x1xf32>
    %43 = tpu.reciprocal %42 : vector<2x1xf32> -> vector<2x1xf32>
    %44 = vector.broadcast %43 : vector<2x1xf32> to vector<2x24xf32>
    %45 = arith.mulf %40, %44 : vector<2x24xf32>
    %46 = arith.select %28, %45, %33 : vector<2x24xi1>, vector<2x24xf32>
    %47 = tpu.concatenate %46, %3 in 1 : vector<2x24xf32>, vector<2x32xf32> -> vector<2x56xf32>
    %c0_25 = arith.constant 0 : index
    %c0_26 = arith.constant 0 : index
    %48 = vector.load %arg8[%c0_25, %c0_26] : memref<2x56xf32, #tpu.memory_space<vmem>>, vector<2x56xf32>
    tpu.vector_store %arg8[%c0_25, %c0_26], %47 {strides = array<i32>} : memref<2x56xf32, #tpu.memory_space<vmem>>, vector<2x56xf32>,
    return
  }
}

</mosaic_0001>

<bundles_post_ra>
// kernel: graphrnn_forward.1
= control target key start
LH: loop header
LB: loop body
LE: loop exit
PB: predicated region body
PF: predicated region fallthrough
CT: control target
= control target key end

     0   :  { %vm36_vm0 = vcmask 1044480   ;;  %v997_v0 = vmov 0.0|0.0   ;;  %vm998_vm1 = vmmov 1   ;;  %vm999_vm3 = vmmov 0   ;;  %s1001_s14 = smov 24   ;;  %s1382_s1 = inlined_call_operand.vmem [shape: f32[13,32], index: 1, kind: input, shape index: {}]   ;;  %s1383_s0 = inlined_call_operand.vmem [shape: f32[2,13], index: 0, kind: input, shape index: {}]   ;;  %s1384_s2 = inlined_call_operand.vmem [shape: f32[32,96], index: 2, kind: input, shape index: {}]   ;;  %s1385_s3 = inlined_call_operand.vmem [shape: f32[13,96], index: 3, kind: input, shape index: {}]   ;;  %s1386_s4 = inlined_call_operand.vmem [shape: f32[96,384], index: 4, kind: input, shape index: {}]   ;;  %s1387_s6 = inlined_call_operand.vmem [shape: f32[384,24], index: 6, kind: input, shape index: {}]   ;;  %s1388_s5 = inlined_call_operand.vmem [shape: f32[1,384], index: 5, kind: input, shape index: {}]   ;;  %s1389_s7 = inlined_call_operand.vmem [shape: f32[1,24], index: 7, kind: input, shape index: {}]   ;;  %s1390_s8 = inlined_call_operand.vmem [shape: f32[2,56], index: 8, kind: output, shape index: {}]  }
   0x1   :  { %869 = vmatprep.subr.bf16.mxu0 %v997_v0  ;;  %v30_v1 = vld [vmem:[%s1382_s1] sm:$0xff]  ;;  %v31_v2 = vld [vmem:[%s1382_s1 + $0x8] sm:$0x1f]  ;;  %vm1054_vm2 = vmpackc.low %vm36_vm0, %vm998_vm1  ;;  %877 = vmatprep.subr.bf16.mxu1 %v997_v0  ;;  %v1000_v5 = vmov 0.0   ;;  %vm32_vm4 = vcmask 105472   ;;  %vm190_vm5 = vcmask 261120  }
   0x2   :  { %v870_v4 = vpack.c.bf16 %v31_v2, %v30_v1  ;;  %786 = vmatprep.mubr.msk.f32.mxu0 %vm999_vm3, %v1000_v5  ;;  %804 = vmatprep.mubr.msk.f32.mxu1 %vm999_vm3, %v1000_v5  ;;  %v29_v6 = vld [vmem:[%s1383_s0] sm:$0x3]  ;;  %v112_v8 = vld [vmem:[%s1384_s2 + $0x8] sm:$0xff]  ;;  %v113_v12 = vld [vmem:[%s1384_s2 + $0x10] sm:$0xff]  ;;  %vm318_vm6 = vcmask 785408   ;;  %vm673_vm10 = vcmask 189440  }
   0x3   :  { %v111_v7 = vld [vmem:[%s1384_s2] sm:$0xff]  ;;  %v116_v11 = vld [vmem:[%s1385_s3 + $0x8] sm:$0x1f]  ;;  %v114_v13 = vld [vmem:[%s1384_s2 + $0x18] sm:$0xff]  ;;  %vm689_vm11 = vcmask 195584   ;;  %vm691_vm12 = vcmask 451584  }
   0x4   :  { %872 = vmatpush3.bf16.msk.msra.mxu0 %vm1054_vm2, %v870_v4  ;;  %v115_v9 = vld [vmem:[%s1385_s3] sm:$0xff]  ;;  %v878_v10 = vpack.c.bf16 %v112_v8, %v111_v7  ;;  %v881_v15 = vpack.c.bf16 %v114_v13, %v113_v12  ;;  %v266_v16 = vld [vmem:[%s1386_s4 + $0x8] sm:$0xff]  ;;  %v268_v21 = vld [vmem:[%s1386_s4 + $0x18] sm:$0xff] }
   0x5   :  { %873 = vmatprep.subr.bf16.mxu0 %v997_v0  ;;  %v874_v14 = vpack.c.bf16 %v116_v11, %v115_v9  ;;  %v269_v17 = vld [vmem:[%s1386_s4 + $0x20] sm:$0xff]  ;;  %v272_v24 = vld [vmem:[%s1386_s4 + $0x38] sm:$0xff]  ;;  %v275_v25 = vld [vmem:[%s1386_s4 + $0x50] sm:$0xff] }
   0x6   :  { %879 = vmatpush3.bf16.msra.mxu1 %v878_v10  ;;  %v265_v18 = vld [vmem:[%s1386_s4] sm:$0xff]  ;;  %v883_v20 = vpack.c.bf16 %v269_v17, %v266_v16  ;;  %v271_v26 = vld [vmem:[%s1386_s4 + $0x30] sm:$0xff]  ;;  %v887_v27 = vpack.c.bf16 %v275_v25, %v272_v24  ;;  %v274_v28 = vld [vmem:[%s1386_s4 + $0x48] sm:$0xff] }
   0x7   :  { %787 = vmatmul.mubr.msk.f32.vlgmr.msra.gmra.mrb[0].mxu0 %vm32_vm4, %v29_v6  ;;  %880 = vmatprep.subr.bf16.mxu1 %v997_v0  ;;  %v885_v23 = vpack.c.bf16 %v268_v21, %v265_v18  ;;  %v889_v29 = vpack.c.bf16 %v274_v28, %v271_v26  ;;  %v278_v30 = vld [vmem:[%s1386_s4 + $0x68] sm:$0xff]  ;;  %v281_v31 = vld [vmem:[%s1386_s4 + $0x80] sm:$0xff]  ;;  %v280_v34 = vld [vmem:[%s1386_s4 + $0x78] sm:$0xff] }
   0x8   :  { %793 = vmatprep.mubr.msk.f32.mxu0 %vm999_vm3, %v1000_v5  ;;  %876 = vmatpush3.bf16.msk.msra.mxu0 %vm1054_vm2, %v874_v14  ;;  %v891_v32 = vpack.c.bf16 %v281_v31, %v278_v30  ;;  %v277_v33 = vld [vmem:[%s1386_s4 + $0x60] sm:$0xff]  ;;  %v267_v35 = vld [vmem:[%s1386_s4 + $0x10] sm:$0xff]  ;;  %v270_v36 = vld [vmem:[%s1386_s4 + $0x28] sm:$0xff] }
   0x9   :  { %884 = vmatprep.subr.bf16.mxu0 %v883_v20  ;;  %v284_v37 = vld [vmem:[%s1386_s4 + $0x98] sm:$0xff]  ;;  %v287_v38 = vld [vmem:[%s1386_s4 + $0xb0] sm:$0xff]  ;;  %v893_v39 = vpack.c.bf16 %v280_v34, %v277_v33  ;;  %v286_v41 = vld [vmem:[%s1386_s4 + $0xa8] sm:$0xff]  ;;  %v908_v42 = vpack.c.bf16 %v270_v36, %v267_v35 }
   0xa   :  { %882 = vmatpush3.bf16.msra.mxu1 %v881_v15  ;;  %v283_v40 = vld [vmem:[%s1386_s4 + $0x90] sm:$0xff]  ;;  %v895_v43 = vpack.c.bf16 %v287_v38, %v284_v37  ;;  %v290_v44 = vld [vmem:[%s1386_s4 + $0xc8] sm:$0xff]  ;;  %v293_v45 = vld [vmem:[%s1386_s4 + $0xe0] sm:$0xff] }
   0xb   :  { %794 = vmatmul.mubr.msk.f32.vlgmr.msra.gmra.mrb[2].mxu0 %vm32_vm4, %v29_v6  ;;  %907 = vmatprep.subr.bf16.mxu1 %v997_v0  ;;  %v273_v46 = vld [vmem:[%s1386_s4 + $0x40] sm:$0xff]  ;;  %v276_v47 = vld [vmem:[%s1386_s4 + $0x58] sm:$0xff]  ;;  %v897_v49 = vpack.c.bf16 %v286_v41, %v283_v40  ;;  %v899_v50 = vpack.c.bf16 %v293_v45, %v290_v44  ;;  %v279_v54 = vld [vmem:[%s1386_s4 + $0x70] sm:$0xff] }
   0xc   :  { %386 = vmatprep.mubr.f32.mxu0 %v1000_v5  ;;  %886 = vmatpush1.bf16.msra.mxu0 %v885_v23  ;;  %v289_v51 = vld [vmem:[%s1386_s4 + $0xc0] sm:$0xff]  ;;  %v292_v52 = vld [vmem:[%s1386_s4 + $0xd8] sm:$0xff]  ;;  %v911_v53 = vpack.c.bf16 %v276_v47, %v273_v46  ;;  %v282_v55 = vld [vmem:[%s1386_s4 + $0x88] sm:$0xff] }
   0xd   :  { %888 = vmatprep.subr.bf16.mxu0 %v887_v27  ;;  %v901_v56 = vpack.c.bf16 %v292_v52, %v289_v51  ;;  %v914_v57 = vpack.c.bf16 %v282_v55, %v279_v54  ;;  %v285_v58 = vld [vmem:[%s1386_s4 + $0xa0] sm:$0xff]  ;;  %v288_v59 = vld [vmem:[%s1386_s4 + $0xb8] sm:$0xff]  ;;  %v291_v61 = vld [vmem:[%s1386_s4 + $0xd0] sm:$0xff] }
   0xe   :  { %v917_v60 = vpack.c.bf16 %v288_v59, %v285_v58  ;;  %v294_v62 = vld [vmem:[%s1386_s4 + $0xe8] sm:$0xff]  ;;  %v296_v3 = vld [vmem:[%s1386_s4 + $0xf8] sm:$0xff]  ;;  %v299_v4 = vld [vmem:[%s1386_s4 + $0x110] sm:$0xff] }
   0xf   :  { %v920_v63 = vpack.c.bf16 %v294_v62, %v291_v61  ;;  %v903_v6 = vpack.c.bf16 %v299_v4, %v296_v3  ;;  %v295_v7 = vld [vmem:[%s1386_s4 + $0xf0] sm:$0xff]  ;;  %v298_v8 = vld [vmem:[%s1386_s4 + $0x108] sm:$0xff]  ;;  %v297_v9 = vld [vmem:[%s1386_s4 + $0x100] sm:$0xff] }
  0x10   :  { %890 = vmatpush1.bf16.msra.mxu0 %v889_v29  ;;  %v905_v10 = vpack.c.bf16 %v298_v8, %v295_v7  ;;  %v300_v11 = vld [vmem:[%s1386_s4 + $0x118] sm:$0xff]  ;;  %v482_v13 = vld [vmem:[%s1387_s6 + $0x80] sm:$0xff]  ;;  %v483_v14 = vld [vmem:[%s1387_s6 + $0x88] sm:$0xff] }
  0x11   :  { %892 = vmatprep.subr.bf16.mxu0 %v891_v32  ;;  %v923_v12 = vpack.c.bf16 %v300_v11, %v297_v9  ;;  %v925_v15 = vpack.c.bf16 %v483_v14, %v482_v13  ;;  %v498_v16 = vld [vmem:[%s1387_s6 + $0x100] sm:$0xff]  ;;  %v499_v17 = vld [vmem:[%s1387_s6 + $0x108] sm:$0xff]  ;;  %v484_v21 = vld [vmem:[%s1387_s6 + $0x90] sm:$0xff] }
  0x12   :  { %v466_v18 = vld [vmem:[%s1387_s6] sm:$0xff]  ;;  %v958_v25 = vpack.c.bf16 %v499_v17, %v498_v16  ;;  %v500_v27 = vld [vmem:[%s1387_s6 + $0x110] sm:$0xff]  ;;  %v501_v29 = vld [vmem:[%s1387_s6 + $0x118] sm:$0xff] }
  0x13   :  { %v468_v31 = vld [vmem:[%s1387_s6 + $0x10] sm:$0xff]  ;;  %v469_v32 = vld [vmem:[%s1387_s6 + $0x18] sm:$0xff]  ;;  %v486_v33 = vld [vmem:[%s1387_s6 + $0xa0] sm:$0xff]  ;;  %v961_v35 = vpack.c.bf16 %v501_v29, %v500_v27 }
  0x14   :  { %894 = vmatpush1.bf16.msra.mxu0 %v893_v39  ;;  %v487_v34 = vld [vmem:[%s1387_s6 + $0xa8] sm:$0xff]  ;;  %v931_v36 = vpack.c.bf16 %v469_v32, %v468_v31  ;;  %v502_v37 = vld [vmem:[%s1387_s6 + $0x120] sm:$0xff]  ;;  %v504_v46 = vld [vmem:[%s1387_s6 + $0x130] sm:$0xff] }
  0x15   :  { %896 = vmatprep.subr.bf16.mxu0 %v895_v43  ;;  %v503_v38 = vld [vmem:[%s1387_s6 + $0x128] sm:$0xff]  ;;  %v933_v39 = vpack.c.bf16 %v487_v34, %v486_v33  ;;  %v470_v40 = vld [vmem:[%s1387_s6 + $0x20] sm:$0xff]  ;;  %v489_v43 = vld [vmem:[%s1387_s6 + $0xb8] sm:$0xff] }
  0x16   :  { %v471_v41 = vld [vmem:[%s1387_s6 + $0x28] sm:$0xff]  ;;  %v964_v44 = vpack.c.bf16 %v503_v38, %v502_v37  ;;  %v505_v47 = vld [vmem:[%s1387_s6 + $0x138] sm:$0xff]  ;;  %v506_v54 = vld [vmem:[%s1387_s6 + $0x140] sm:$0xff] }
  0x17   :  { %v935_v45 = vpack.c.bf16 %v471_v41, %v470_v40  ;;  %v491_v51 = vld [vmem:[%s1387_s6 + $0xc8] sm:$0xff]  ;;  %v967_v52 = vpack.c.bf16 %v505_v47, %v504_v46  ;;  %v492_v59 = vld [vmem:[%s1387_s6 + $0xd0] sm:$0xff]  ;;  %v477_v4 = vld [vmem:[%s1387_s6 + $0x58] sm:$0xff] }
  0x18   :  { %898 = vmatpush1.bf16.msra.mxu0 %v897_v49  ;;  %v473_v49 = vld [vmem:[%s1387_s6 + $0x38] sm:$0xff]  ;;  %v507_v55 = vld [vmem:[%s1387_s6 + $0x148] sm:$0xff]  ;;  %v476_v3 = vld [vmem:[%s1387_s6 + $0x50] sm:$0xff] }
  0x19   :  { %900 = vmatprep.subr.bf16.mxu0 %v899_v50  ;;  %v490_v50 = vld [vmem:[%s1387_s6 + $0xc0] sm:$0xff]  ;;  %v475_v58 = vld [vmem:[%s1387_s6 + $0x48] sm:$0xff]  ;;  %v970_v61 = vpack.c.bf16 %v507_v55, %v506_v54  ;;  %v947_v9 = vpack.c.bf16 %v477_v4, %v476_v3  ;;  %v512_v17 = vld [vmem:[%s1387_s6 + $0x170] sm:$0xff] }
  0x1a   :  { %v495_v7 = vld [vmem:[%s1387_s6 + $0xe8] sm:$0xff]  ;;  %v478_v14 = vld [vmem:[%s1387_s6 + $0x60] sm:$0xff] }
  0x1b   :  { %v511_v11 = vld [vmem:[%s1387_s6 + $0x168] sm:$0xff]  ;;  %v301_v29 = vld [vmem:[%s1388_s5] sm:$0x7] }
  0x1c   :  { %902 = vmatpush1.bf16.msra.mxu0 %v901_v56  ;;  %v941_v56 = vpack.c.bf16 %v491_v51, %v490_v50 }
  0x1d   :  { %904 = vmatprep.subr.bf16.mxu0 %v903_v6  ;;  %v494_v6 = vld [vmem:[%s1387_s6 + $0xe0] sm:$0xff] }
  0x20   :  { %906 = vmatpush1.bf16.msra.mxu0 %v905_v10  ;;  %v510_v10 = vld [vmem:[%s1387_s6 + $0x160] sm:$0xff] }
  0x21   :  { %926 = vmatprep.subr.bf16.mxu0 %v925_v15  ;;  %v976_v13 = vpack.c.bf16 %v511_v11, %v510_v10  ;;  %v479_v15 = vld [vmem:[%s1387_s6 + $0x68] sm:$0xff] }
  0x22   :  { %v951_v16 = vpack.c.bf16 %v479_v15, %v478_v14 }
  0xda   :  { %v106_v19 = vpop.f32.mrb[0].mxu0 }
  0xdb   :  { %987 = vtanh.f32 %v106_v19  ;;  %v788_v22 = vpop.f32.mrb[1].mxu0  ;;  %v467_v19 = vld [vmem:[%s1387_s6 + $0x8] sm:$0xff] }
  0xdc   :  { %v485_v22 = vld [vmem:[%s1387_s6 + $0x98] sm:$0xff]  ;;  %v927_v26 = vpack.c.bf16 %v467_v19, %v466_v18 }
  0xdd   :  { %v929_v30 = vpack.c.bf16 %v485_v22, %v484_v21  ;;  %v513_v18 = vld [vmem:[%s1387_s6 + $0x178] sm:$0xff]  ;;  %v480_v22 = vld [vmem:[%s1387_s6 + $0x70] sm:$0xff] }
  0xde   :  { %v186_v1 = vpop.f32.mrb[2].mxu0  ;;  %v979_v19 = vpack.c.bf16 %v513_v18, %v512_v17 }
  0xdf   :  { %v795_v2 = vpop.f32.mrb[3].mxu0 }
  0xe5   :  { %v988_v48 = vpop.eup %987 }
  0xe6   :  { %686 = vrot.lane.b32.xlu1 %v988_v48, %s1001_s14  ;;  %805 = vmatmul.mubr.msk.f32.vlgmr.msra.gmra.mrb[0].mxu1 %vm190_vm5, %v988_v48 }
  0xe7   :  { %909 = vmatpush3.bf16.msra.mxu1 %v908_v42  ;;  %831 = vmatprep.mubr.msk.f32.mxu1 %vm999_vm3, %v1000_v5  ;;  %v488_v42 = vld [vmem:[%s1387_s6 + $0xb0] sm:$0xff] }
  0xe8   :  { %910 = vmatprep.subr.bf16.mxu1 %v997_v0  ;;  %v937_v48 = vpack.c.bf16 %v489_v43, %v488_v42 }
  0xeb   :  { %912 = vmatpush3.bf16.msra.mxu1 %v911_v53 }
  0xec   :  { %913 = vmatprep.subr.bf16.mxu1 %v997_v0 }
  0xef   :  { %915 = vmatpush3.bf16.msra.mxu1 %v914_v57  ;;  %v474_v57 = vld [vmem:[%s1387_s6 + $0x40] sm:$0xff] }
  0xf0   :  { %916 = vmatprep.subr.bf16.mxu1 %v997_v0  ;;  %v943_v62 = vpack.c.bf16 %v475_v58, %v474_v57 }
  0xf3   :  { %918 = vmatpush3.bf16.msra.mxu1 %v917_v60  ;;  %v493_v60 = vld [vmem:[%s1387_s6 + $0xd8] sm:$0xff] }
  0xf4   :  { %919 = vmatprep.subr.bf16.mxu1 %v997_v0  ;;  %v945_v2 = vpack.c.bf16 %v493_v60, %v492_v59 }
  0xf7   :  { %921 = vmatpush3.bf16.msra.mxu1 %v920_v63  ;;  %v508_v63 = vld [vmem:[%s1387_s6 + $0x150] sm:$0xff] }
  0xf8   :  { %922 = vmatprep.subr.bf16.mxu1 %v997_v0 }
  0xfb   :  { %924 = vmatpush3.bf16.msra.mxu1 %v923_v12  ;;  %v949_v12 = vpack.c.bf16 %v495_v7, %v494_v6 }
  0xfc   :  { %957 = vmatprep.subr.bf16.mxu1 %v997_v0 }
 0x158   :  { %v687_v4 = vpop.permute.xlu1 %686 }
 0x1b9   :  { %v260_v20 = vpop.f32.mrb[0].mxu1 }
 0x1ba   :  { %v261_v23 = vadd.f32 %v260_v20, %v186_v1  ;;  %v806_v24 = vpop.f32.mrb[1].mxu1  ;;  %v509_v1 = vld [vmem:[%s1387_s6 + $0x158] sm:$0xff] }
 0x1bb   :  { %v973_v8 = vpack.c.bf16 %v509_v1, %v508_v63  ;;  %v497_v20 = vld [vmem:[%s1387_s6 + $0xf8] sm:$0xff] }
 0x1bc   :  { %v264_v28 = vmax.f32 %v261_v23, 0.0  ;;  %v481_v23 = vld [vmem:[%s1387_s6 + $0x78] sm:$0xff] }
 0x1bd   :  { %v955_v24 = vpack.c.bf16 %v481_v23, %v480_v22 }
 0x1be   :  { %702 = vmatmul.mubr.msk.f32.vlgmr.msra.gmra.mrb[4].mxu0 %vm318_vm6, %v264_v28  ;;  %832 = vmatmul.mubr.msk.f32.vlgmr.msra.gmra.mrb[2].mxu1 %vm318_vm6, %v264_v28 }
 0x1bf   :  { %959 = vmatpush3.bf16.msra.mxu1 %v958_v25  ;;  %928 = vmatpush3.bf16.msra.mxu0 %v927_v26  ;;  %v303_v25 = vlaneseq }
 0x1c0   :  { %960 = vmatprep.subr.bf16.mxu1 %v997_v0  ;;  %930 = vmatprep.subr.bf16.mxu0 %v929_v30 }
 0x1c1   :  { %866 = vmatprep.mubr.msk.f32.mxu1 %vm999_vm3, %v1000_v5  ;;  %v472_v5 = vld [vmem:[%s1387_s6 + $0x30] sm:$0xff]  ;;  %v304_v26 = vshrl.u32 %v303_v25, 7 }
 0x1c2   :  { %v939_v53 = vpack.c.bf16 %v473_v49, %v472_v5 }
 0x1c3   :  { %962 = vmatpush3.bf16.msra.mxu1 %v961_v35  ;;  %932 = vmatpush3.bf16.msra.mxu0 %v931_v36  ;;  %v305_v27 = vsub.s32 0, %v304_v26  ;;  %v313_v28 = vsub.s32 2, %v304_v26  ;;  %v309_v30 = vsub.s32 1, %v304_v26 }
 0x1c4   :  { %963 = vmatprep.subr.bf16.mxu1 %v997_v0  ;;  %934 = vmatprep.subr.bf16.mxu0 %v933_v39 }
 0x1c5   :  { %v306_v31 = vrot.slane %v301_v29, %v305_v27  ;;  %v314_v32 = vrot.slane %v301_v29, %v313_v28  ;;  %v310_v33 = vrot.slane %v301_v29, %v309_v30 }
 0x1c7   :  { %965 = vmatpush3.bf16.msra.mxu1 %v964_v44  ;;  %936 = vmatpush3.bf16.msra.mxu0 %v935_v45  ;;  %v662_v45 = vand.u32 127, %v303_v25 }
 0x1c8   :  { %966 = vmatprep.subr.bf16.mxu1 %v997_v0  ;;  %938 = vmatprep.subr.bf16.mxu0 %v937_v48  ;;  %v704_v48 = vld [vmem:[%s1389_s7] ss:$0 sm:$0xff] }
 0x1c9   :  { %vm663_vm7 = vcmp.ge.s32.totalorder %v662_v45, 8  ;;  %vm664_vm8 = vcmp.lt.s32.totalorder %v662_v45, 16 }
 0x1ca   :  { %vm1371_vm9 = vmand %vm663_vm7, %vm664_vm8 }
 0x1cb   :  { %968 = vmatpush3.bf16.msra.mxu1 %v967_v52  ;;  %940 = vmatpush3.bf16.msra.mxu0 %v939_v53 }
 0x1cc   :  { %969 = vmatprep.subr.bf16.mxu1 %v997_v0  ;;  %942 = vmatprep.subr.bf16.mxu0 %v941_v56 }
 0x1cf   :  { %971 = vmatpush3.bf16.msra.mxu1 %v970_v61  ;;  %944 = vmatpush3.bf16.msra.mxu0 %v943_v62 }
 0x1d0   :  { %972 = vmatprep.subr.bf16.mxu1 %v997_v0  ;;  %946 = vmatprep.subr.bf16.mxu0 %v945_v2 }
 0x1d3   :  { %974 = vmatpush3.bf16.msra.mxu1 %v973_v8  ;;  %948 = vmatpush3.bf16.msra.mxu0 %v947_v9 }
 0x1d4   :  { %975 = vmatprep.subr.bf16.mxu1 %v997_v0  ;;  %950 = vmatprep.subr.bf16.mxu0 %v949_v12 }
 0x1d7   :  { %977 = vmatpush3.bf16.msra.mxu1 %v976_v13  ;;  %952 = vmatpush3.bf16.msra.mxu0 %v951_v16 }
 0x1d8   :  { %978 = vmatprep.subr.bf16.mxu1 %v997_v0  ;;  %v496_v0 = vld [vmem:[%s1387_s6 + $0xf0] sm:$0xff] }
 0x1d9   :  { %v953_v21 = vpack.c.bf16 %v497_v20, %v496_v0 }
 0x1db   :  { %980 = vmatpush3.bf16.msra.mxu1 %v979_v19  ;;  %954 = vmatprep.subr.bf16.mxu0 %v953_v21 }
 0x1dc   :  { %956 = vmatpush3.bf16.msra.mxu0 %v955_v24 }
 0x291   :  { %v388_v34 = vpop.f32.mrb[4].mxu0  ;;  %v459_v35 = vpop.f32.mrb[2].mxu1 }
 0x292   :  { %v389_v36 = vadd.f32 %v388_v34, %v306_v31  ;;  %v460_v37 = vadd.f32 %v459_v35, %v314_v32  ;;  %v390_v38 = vpop.f32.mrb[5].mxu0  ;;  %v833_v39 = vpop.f32.mrb[3].mxu1 }
 0x293   :  { %v391_v40 = vadd.f32 %v390_v38, %v310_v33 }
 0x294   :  { %v465_v41 = vmax.f32 %v460_v37, 0.0  ;;  %v463_v43 = vmax.f32 %v389_v36, 0.0 }
 0x295   :  { %v464_v42 = vmax.f32 %v391_v40, 0.0 }
 0x296   :  { %867 = vmatmul.mubr.f32.vlgmr.msra.gmra.mrb[4].mxu1 %v465_v41 }
 0x297   :  { %585 = vmatprep.mubr.f32.mxu0 %v464_v42 }
 0x298   :  { %586 = vmatmul.mubr.f32.vlgmr.msra.gmra.mrb[6].mxu0 %v463_v43 }
 0x369   :  { %v657_v44 = vpop.f32.mrb[4].mxu1 }
 0x36a   :  { %v868_v46 = vpop.f32.mrb[5].mxu1 }
 0x36b   :  { %v762_v47 = vpop.f32.mrb[6].mxu0 }
 0x36c   :  { %v763_v5 = vpop.f32.mrb[7].mxu0 }
 0x36d   :  { %v764_v49 = vadd.f32 %v763_v5, %v762_v47 }
 0x36f   :  { %v588_v50 = vadd.f32 %v764_v49, %v704_v48 }
 0x371   :  { %v658_v52 = vadd.f32 %v657_v44, %v588_v50 }
 0x373   :  { %v672_v53 = vsel %vm1371_vm9, %v658_v52, -inf  ;;  %v705_v60 = vmul.f32 -1.442695, %v658_v52 }
 0x374   :  { %v674_v54 = vsel %vm673_vm10, %v672_v53, -inf }
 0x375   :  { %675 = vmax.xlane.f32.xlu0 %v674_v54 }
 0x402   :  { %v676_v55 = vpop.xlane.xlu0 %675 }
 0x403   :  { %v677_v56 = vsub.f32 %v672_v53, %v676_v55 }
 0x405   :  { %v678_v57 = vmul.f32 1.442695, %v677_v56 }
 0x407   :  { %989 = vpow2.f32 %v678_v57 }
 0x408   :  { %991 = vpow2.f32 %v705_v60 }
 0x411   :  { %v990_v58 = vpop.eup %989 }
 0x412   :  { %v680_v59 = vsel %vm673_vm10, %v990_v58, 0.0  ;;  %v992_v61 = vpop.eup %991 }
 0x413   :  { %681 = vadd.xlane.f32.xlu0 %v680_v59  ;;  %v669_v62 = vadd.f32 1.0, %v992_v61 }
 0x4a0   :  { %v682_v63 = vpop.xlane.xlu0 %681 }
 0x4a1   :  { %993 = vrcp.f32 %v682_v63 }
 0x4a2   :  { %995 = vrcp.f32 %v669_v62 }
 0x4ab   :  { %v994_v1 = vpop.eup %993 }
 0x4ac   :  { %v684_v2 = vmul.f32 %v994_v1, %v990_v58  ;;  %v996_v3 = vpop.eup %995 }
 0x4ae   :  { %v685_v6 = vsel %vm1371_vm9, %v684_v2, %v996_v3 }
 0x4af   :  { %v690_v7 = vsel %vm689_vm11, %v685_v6, %v687_v4 }
 0x4b0   :  { %692 = vst.msk [vmem:[%s1390_s8] sm:$0x3] %vm691_vm12, %v690_v7 }

</bundles_post_ra>
